<compile_context>
chip_gen: v6e
topology: v6e:2x2x1
jax: 0.10.0
libtpu: 0.0.40
codegen_flags: <defaults>
</compile_context>

<pallas_src>
import functools

import jax
import jax.numpy as jnp
from jax import lax
from jax.experimental import pallas as pl
from jax.experimental.pallas import tpu as pltpu


def _round_up(x, m):
    return ((x + m - 1) // m) * m


def _ce_kernel(targets_ref, logits_ref, out_ref, m_ref, l_ref, s_ref, t_ref,
               *, eps, num_classes, class_tile, mask_classes):
    ct = pl.program_id(1)

    @pl.when(ct == 0)
    def _init():
        m_ref[...] = jnp.full_like(m_ref, -jnp.inf)
        l_ref[...] = jnp.zeros_like(l_ref)
        s_ref[...] = jnp.zeros_like(s_ref)
        t_ref[...] = jnp.zeros_like(t_ref)

    logits = logits_ref[...].astype(jnp.float32)            # (TB, TC)
    tb, tc = logits.shape
    tgt = targets_ref[...]                                   # (TB, 1) int32

    # global class index of every lane in this tile
    col = lax.broadcasted_iota(jnp.int32, (tb, tc), 1) + ct * class_tile

    if mask_classes:
        valid = col < num_classes
        masked_logits = jnp.where(valid, logits, -jnp.inf)
        sum_logits = jnp.sum(jnp.where(valid, logits, 0.0), axis=1, keepdims=True)
    else:
        masked_logits = logits
        sum_logits = jnp.sum(logits, axis=1, keepdims=True)

    # online logsumexp across class tiles (running max + rescaled sum-exp)
    tile_max = jnp.max(masked_logits, axis=1, keepdims=True)  # finite: >=1 valid lane
    m_old = m_ref[...]
    m_new = jnp.maximum(m_old, tile_max)
    p_sum = jnp.sum(jnp.exp(masked_logits - m_new), axis=1, keepdims=True)
    l_ref[...] = jnp.exp(m_old - m_new) * l_ref[...] + p_sum
    m_ref[...] = m_new

    # running sum of logits (for the eps/C term) and target-logit gather
    s_ref[...] += sum_logits
    t_ref[...] += jnp.sum(jnp.where(col == tgt, logits, 0.0), axis=1, keepdims=True)

    @pl.when(ct == pl.num_programs(1) - 1)
    def _finalize():
        lse = m_ref[...] + jnp.log(l_ref[...])                # (TB, 1)
        c = float(num_classes)
        loss = (1.0 - eps) * (lse - t_ref[...]) + (eps / c) * (c * lse - s_ref[...])
        # lane-dense, unmasked store; wrapper reads column 0
        out_ref[...] = jnp.broadcast_to(loss, out_ref.shape).astype(out_ref.dtype)


def cross_entropy_label_smooth(logits, targets, *, num_classes, epsilon=0.1,
                               label_smooth=True, batch_tile=256, class_tile=8192):
    """Pallas-accelerated torchreid CrossEntropyLoss forward.

    loss = sum_c mean_b( -smoothed_onehot[b,c] * log_softmax(logits)[b,c] )
    """
    assert logits.ndim == 2, "logits must be (batch, num_classes)"
    eps = float(epsilon) if label_smooth else 0.0
    B, C = logits.shape

    # Tile sizes: multiples of (8, 128); shrink to the (padded) array for small shapes.
    TB = min(batch_tile, _round_up(B, 8))
    TC = min(class_tile, _round_up(C, 128))
    B_pad = _round_up(B, TB)
    C_pad = _round_up(C, TC)

    logits_p = logits
    if (B_pad, C_pad) != (B, C):
        logits_p = jnp.pad(logits, ((0, B_pad - B), (0, C_pad - C)))
    targets_p = jnp.pad(targets.astype(jnp.int32), (0, B_pad - B)).reshape(B_pad, 1)

    n_bt = B_pad // TB
    n_ct = C_pad // TC

    kernel = functools.partial(
        _ce_kernel,
        eps=eps,
        num_classes=C,
        class_tile=TC,
        mask_classes=(C % TC != 0),
    )

    # VMEM budget: double-buffered logits tiles dominate; leave headroom but
    # stay <= 48 MiB so it is safe on v5e/v6e (128 MiB) and v7x (64 MiB).
    block_bytes = TB * TC * jnp.dtype(logits_p.dtype).itemsize
    vmem_limit = int(min(max(2 * block_bytes + (8 << 20), 32 << 20), 48 << 20))

    out = pl.pallas_call(
        kernel,
        out_shape=jax.ShapeDtypeStruct((B_pad, 128), jnp.float32),
        grid_spec=pltpu.PrefetchScalarGridSpec(
            num_scalar_prefetch=0,
            grid=(n_bt, n_ct),
            in_specs=[
                pl.BlockSpec((TB, 1), lambda b, c: (b, 0)),    # targets (revisited -> 1 DMA/row-tile)
                pl.BlockSpec((TB, TC), lambda b, c: (b, c)),   # logits stream
            ],
            out_specs=pl.BlockSpec((TB, 128), lambda b, c: (b, 0)),
            scratch_shapes=[pltpu.VMEM((TB, 1), jnp.float32)] * 4,  # m, l, sum, target-logit
        ),
        compiler_params=pltpu.CompilerParams(
            dimension_semantics=("parallel", "arbitrary"),
            vmem_limit_bytes=vmem_limit,
        ),
    )(targets_p, logits_p)

    per_row = out[:B, 0]          # lane 0 holds the per-row loss
    return jnp.sum(per_row) / B   # == sum_c mean_b(...)


class FaceLoss:
    """Mirror of torchreid FaceLoss: wraps a label-smoothed CrossEntropyLoss."""

    def __init__(self, out_features, use_gpu=False, label_smooth=True):
        self.num_classes = out_features
        self.label_smooth = label_smooth
        self.epsilon = 0.1  # torchreid CrossEntropyLoss default

    def forward(self, input, **kwargs):
        # PyTorch forward body is `pass` -> returns None.  Reproduced exactly.
        return None

    def cross_entropy(self, logits, targets):
        # The compute the module owns (self.cross_entropy in PyTorch),
        # implemented as a Pallas TPU kernel.
        return cross_entropy_label_smooth(
            logits, targets,
            num_classes=self.num_classes,
            epsilon=self.epsilon,
            label_smooth=self.label_smooth,
        )


def _reference(logits, targets, num_classes, epsilon=0.1):
    log_probs = jax.nn.log_softmax(logits.astype(jnp.float32), axis=1)
    onehot = jax.nn.one_hot(targets, num_classes, dtype=jnp.float32)
    smoothed = (1.0 - epsilon) * onehot + epsilon / num_classes
    return jnp.sum(jnp.mean(-smoothed * log_probs, axis=0))


if __name__ == "__main__":
    key = jax.random.PRNGKey(0)
    k1, k2, k3, k4 = jax.random.split(key, 4)

    # --- small module-level test (single tile) ---
    batch = 8
    out_features = 32
    logits = jax.random.normal(k1, (batch, out_features), dtype=jnp.float32)
    targets = jax.random.randint(k2, (batch,), 0, out_features, dtype=jnp.int32)

    module = FaceLoss(out_features=out_features, use_gpu=False, label_smooth=True)
    assert module.forward(logits) is None  # faithful to the PyTorch forward (`pass`)

    loss = jax.block_until_ready(module.cross_entropy(logits, targets))
    ref = _reference(logits, targets, out_features, epsilon=0.1)
    assert jnp.allclose(loss, ref, rtol=1e-4, atol=1e-4), (loss, ref)

    # --- multi-tile test: exercises batch tiling, online logsumexp across
    #     class tiles, and padded-lane masking (C=520 not a multiple of 128) ---
    B2, C2 = 24, 520
    logits2 = jax.random.normal(k3, (B2, C2), dtype=jnp.float32)
    targets2 = jax.random.randint(k4, (B2,), 0, C2, dtype=jnp.int32)
    loss2 = jax.block_until_ready(
        cross_entropy_label_smooth(logits2, targets2, num_classes=C2,
                                   epsilon=0.1, label_smooth=True,
                                   batch_tile=8, class_tile=128))
    ref2 = _reference(logits2, targets2, C2, epsilon=0.1)
    assert jnp.allclose(loss2, ref2, rtol=1e-4, atol=1e-4), (loss2, ref2)

    print("KERNEL_OK")
</pallas_src>

<mosaic_0001>
module attributes {stable_mosaic.version = 11 : i64} {
  func.func @_ce_kernel(%arg0: i32, %arg1: i32, %arg2: memref<8x1xi32, #tpu.memory_space<vmem>>, %arg3: memref<8x128xf32, #tpu.memory_space<vmem>>, %arg4: memref<8x128xf32, #tpu.memory_space<vmem>>, %arg5: memref<8x1xf32, #tpu.memory_space<vmem>>, %arg6: memref<8x1xf32, #tpu.memory_space<vmem>>, %arg7: memref<8x1xf32, #tpu.memory_space<vmem>>, %arg8: memref<8x1xf32, #tpu.memory_space<vmem>>) attributes {dimension_semantics = [#tpu.dimension_semantics<parallel>, #tpu.dimension_semantics<arbitrary>], iteration_bounds = array<i64: 1, 1>, scalar_prefetch = 0 : i64, scratch_operands = 4 : i64, tpu.core_type = #tpu.core_type<tc>, window_params = [{transform_indices = @transform_0, window_bounds = array<i64: 8, 1>}, {transform_indices = @transform_1, window_bounds = array<i64: 8, 128>}, {transform_indices = @transform_2, window_bounds = array<i64: 8, 128>}]} {
    %c0_i32 = arith.constant 0 : i32
    %0 = arith.cmpi eq, %arg1, %c0_i32 : i32
    %1 = arith.extui %0 : i1 to i32
    %c0_i32_0 = arith.constant 0 : i32
    %2 = arith.cmpi ne, %1, %c0_i32_0 : i32
    scf.if %2 {
      %cst_28 = arith.constant 0xFF800000 : f32
      %48 = vector.broadcast %cst_28 : f32 to vector<8x1xf32>
      %c0_29 = arith.constant 0 : index
      %c0_30 = arith.constant 0 : index
      %49 = vector.load %arg5[%c0_29, %c0_30] : memref<8x1xf32, #tpu.memory_space<vmem>>, vector<8x1xf32>
      tpu.vector_store %arg5[%c0_29, %c0_30], %48 {strides = array<i32>} : memref<8x1xf32, #tpu.memory_space<vmem>>, vector<8x1xf32>,
      %cst_31 = arith.constant 0.000000e+00 : f32
      %50 = vector.broadcast %cst_31 : f32 to vector<8x1xf32>
      %c0_32 = arith.constant 0 : index
      %c0_33 = arith.constant 0 : index
      %51 = vector.load %arg6[%c0_32, %c0_33] : memref<8x1xf32, #tpu.memory_space<vmem>>, vector<8x1xf32>
      tpu.vector_store %arg6[%c0_32, %c0_33], %50 {strides = array<i32>} : memref<8x1xf32, #tpu.memory_space<vmem>>, vector<8x1xf32>,
      %cst_34 = arith.constant 0.000000e+00 : f32
      %52 = vector.broadcast %cst_34 : f32 to vector<8x1xf32>
      %c0_35 = arith.constant 0 : index
      %c0_36 = arith.constant 0 : index
      %53 = vector.load %arg7[%c0_35, %c0_36] : memref<8x1xf32, #tpu.memory_space<vmem>>, vector<8x1xf32>
      tpu.vector_store %arg7[%c0_35, %c0_36], %52 {strides = array<i32>} : memref<8x1xf32, #tpu.memory_space<vmem>>, vector<8x1xf32>,
      %cst_37 = arith.constant 0.000000e+00 : f32
      %54 = vector.broadcast %cst_37 : f32 to vector<8x1xf32>
      %c0_38 = arith.constant 0 : index
      %c0_39 = arith.constant 0 : index
      %55 = vector.load %arg8[%c0_38, %c0_39] : memref<8x1xf32, #tpu.memory_space<vmem>>, vector<8x1xf32>
      tpu.vector_store %arg8[%c0_38, %c0_39], %54 {strides = array<i32>} : memref<8x1xf32, #tpu.memory_space<vmem>>, vector<8x1xf32>,
    } else {
    }
    %c0 = arith.constant 0 : index
    %c0_1 = arith.constant 0 : index
    %3 = vector.load %arg3[%c0, %c0_1] : memref<8x128xf32, #tpu.memory_space<vmem>>, vector<8x128xf32>
    %c0_2 = arith.constant 0 : index
    %c0_3 = arith.constant 0 : index
    %4 = vector.load %arg2[%c0_2, %c0_3] : memref<8x1xi32, #tpu.memory_space<vmem>>, vector<8x1xi32>
    %5 = tpu.iota {dimensions = array<i32: 1>} : vector<8x128xi32>
    %c128_i32 = arith.constant 128 : i32
    %6 = arith.muli %arg1, %c128_i32 : i32
    %7 = vector.broadcast %6 : i32 to vector<8x128xi32>
    %8 = arith.addi %5, %7 : vector<8x128xi32>
    %c32_i32 = arith.constant 32 : i32
    %9 = vector.broadcast %c32_i32 : i32 to vector<8x128xi32>
    %10 = arith.cmpi slt, %8, %9 : vector<8x128xi32>
    %cst = arith.constant 0xFF800000 : f32
    %11 = vector.broadcast %cst : f32 to vector<8x128xf32>
    %12 = arith.select %10, %3, %11 : vector<8x128xi1>, vector<8x128xf32>
    %cst_4 = arith.constant 0.000000e+00 : f32
    %13 = vector.broadcast %cst_4 : f32 to vector<8x128xf32>
    %14 = arith.select %10, %3, %13 : vector<8x128xi1>, vector<8x128xf32>
    %cst_5 = arith.constant dense<0.000000e+00> : vector<8xf32>
    %15 = vector.multi_reduction <add>, %14, %cst_5 [1] : vector<8x128xf32> to vector<8xf32>
    %16 = vector.shape_cast %15 : vector<8xf32> to vector<8x1xf32>
    %cst_6 = arith.constant dense<0xFF800000> : vector<8xf32>
    %17 = vector.multi_reduction <maximumf>, %12, %cst_6 [1] : vector<8x128xf32> to vector<8xf32>
    %18 = vector.shape_cast %17 : vector<8xf32> to vector<8x1xf32>
    %c0_7 = arith.constant 0 : index
    %c0_8 = arith.constant 0 : index
    %19 = vector.load %arg5[%c0_7, %c0_8] : memref<8x1xf32, #tpu.memory_space<vmem>>, vector<8x1xf32>
    %20 = arith.maximumf %19, %18 : vector<8x1xf32>
    %21 = vector.broadcast %20 : vector<8x1xf32> to vector<8x128xf32>
    %22 = arith.subf %12, %21 : vector<8x128xf32>
    %23 = math.exp %22 : vector<8x128xf32>
    %cst_9 = arith.constant dense<0.000000e+00> : vector<8xf32>
    %24 = vector.multi_reduction <add>, %23, %cst_9 [1] : vector<8x128xf32> to vector<8xf32>
    %25 = vector.shape_cast %24 : vector<8xf32> to vector<8x1xf32>
    %26 = arith.subf %19, %20 : vector<8x1xf32>
    %27 = math.exp %26 : vector<8x1xf32>
    %c0_10 = arith.constant 0 : index
    %c0_11 = arith.constant 0 : index
    %28 = vector.load %arg6[%c0_10, %c0_11] : memref<8x1xf32, #tpu.memory_space<vmem>>, vector<8x1xf32>
    %29 = arith.mulf %27, %28 : vector<8x1xf32>
    %30 = arith.addf %29, %25 : vector<8x1xf32>
    %c0_12 = arith.constant 0 : index
    %c0_13 = arith.constant 0 : index
    %31 = vector.load %arg6[%c0_12, %c0_13] : memref<8x1xf32, #tpu.memory_space<vmem>>, vector<8x1xf32>
    tpu.vector_store %arg6[%c0_12, %c0_13], %30 {strides = array<i32>} : memref<8x1xf32, #tpu.memory_space<vmem>>, vector<8x1xf32>,
    %c0_14 = arith.constant 0 : index
    %c0_15 = arith.constant 0 : index
    %32 = vector.load %arg5[%c0_14, %c0_15] : memref<8x1xf32, #tpu.memory_space<vmem>>, vector<8x1xf32>
    tpu.vector_store %arg5[%c0_14, %c0_15], %20 {strides = array<i32>} : memref<8x1xf32, #tpu.memory_space<vmem>>, vector<8x1xf32>,
    %c0_16 = arith.constant 0 : index
    %c0_17 = arith.constant 0 : index
    %33 = vector.load %arg7[%c0_16, %c0_17] : memref<8x1xf32, #tpu.memory_space<vmem>>, vector<8x1xf32>
    %34 = arith.addf %33, %16 : vector<8x1xf32>
    %c0_18 = arith.constant 0 : index
    %c0_19 = arith.constant 0 : index
    %35 = vector.load %arg7[%c0_18, %c0_19] : memref<8x1xf32, #tpu.memory_space<vmem>>, vector<8x1xf32>
    tpu.vector_store %arg7[%c0_18, %c0_19], %34 {strides = array<i32>} : memref<8x1xf32, #tpu.memory_space<vmem>>, vector<8x1xf32>,
    %c0_20 = arith.constant 0 : index
    %c0_21 = arith.constant 0 : index
    %36 = vector.load %arg8[%c0_20, %c0_21] : memref<8x1xf32, #tpu.memory_space<vmem>>, vector<8x1xf32>
    %37 = vector.broadcast %4 : vector<8x1xi32> to vector<8x128xi32>
    %38 = arith.cmpi eq, %8, %37 : vector<8x128xi32>
    %cst_22 = arith.constant 0.000000e+00 : f32
    %39 = vector.broadcast %cst_22 : f32 to vector<8x128xf32>
    %40 = arith.select %38, %3, %39 : vector<8x128xi1>, vector<8x128xf32>
    %cst_23 = arith.constant dense<0.000000e+00> : vector<8xf32>
    %41 = vector.multi_reduction <add>, %40, %cst_23 [1] : vector<8x128xf32> to vector<8xf32>
    %42 = vector.shape_cast %41 : vector<8xf32> to vector<8x1xf32>
    %43 = arith.addf %36, %42 : vector<8x1xf32>
    %c0_24 = arith.constant 0 : index
    %c0_25 = arith.constant 0 : index
    %44 = vector.load %arg8[%c0_24, %c0_25] : memref<8x1xf32, #tpu.memory_space<vmem>>, vector<8x1xf32>
    tpu.vector_store %arg8[%c0_24, %c0_25], %43 {strides = array<i32>} : memref<8x1xf32, #tpu.memory_space<vmem>>, vector<8x1xf32>,
    %c0_i32_26 = arith.constant 0 : i32
    %45 = arith.cmpi eq, %arg1, %c0_i32_26 : i32
    %46 = arith.extui %45 : i1 to i32
    %c0_i32_27 = arith.constant 0 : i32
    %47 = arith.cmpi ne, %46, %c0_i32_27 : i32
    scf.if %47 {
      %c0_28 = arith.constant 0 : index
      %c0_29 = arith.constant 0 : index
      %48 = vector.load %arg5[%c0_28, %c0_29] : memref<8x1xf32, #tpu.memory_space<vmem>>, vector<8x1xf32>
      %c0_30 = arith.constant 0 : index
      %c0_31 = arith.constant 0 : index
      %49 = vector.load %arg6[%c0_30, %c0_31] : memref<8x1xf32, #tpu.memory_space<vmem>>, vector<8x1xf32>
      %50 = math.log %49 : vector<8x1xf32>
      %51 = arith.addf %48, %50 : vector<8x1xf32>
      %c0_32 = arith.constant 0 : index
      %c0_33 = arith.constant 0 : index
      %52 = vector.load %arg8[%c0_32, %c0_33] : memref<8x1xf32, #tpu.memory_space<vmem>>, vector<8x1xf32>
      %53 = arith.subf %51, %52 : vector<8x1xf32>
      %cst_34 = arith.constant 0.899999976 : f32
      %54 = vector.broadcast %cst_34 : f32 to vector<8x1xf32>
      %55 = arith.mulf %54, %53 : vector<8x1xf32>
      %cst_35 = arith.constant 3.200000e+01 : f32
      %56 = vector.broadcast %cst_35 : f32 to vector<8x1xf32>
      %57 = arith.mulf %56, %51 : vector<8x1xf32>
      %c0_36 = arith.constant 0 : index
      %c0_37 = arith.constant 0 : index
      %58 = vector.load %arg7[%c0_36, %c0_37] : memref<8x1xf32, #tpu.memory_space<vmem>>, vector<8x1xf32>
      %59 = arith.subf %57, %58 : vector<8x1xf32>
      %cst_38 = arith.constant 3.125000e-03 : f32
      %60 = vector.broadcast %cst_38 : f32 to vector<8x1xf32>
      %61 = arith.mulf %60, %59 : vector<8x1xf32>
      %62 = arith.addf %55, %61 : vector<8x1xf32>
      %63 = vector.shape_cast %62 : vector<8x1xf32> to vector<8x1xf32>
      %64 = vector.broadcast %63 : vector<8x1xf32> to vector<8x128xf32>
      %c0_39 = arith.constant 0 : index
      %c0_40 = arith.constant 0 : index
      %65 = vector.load %arg4[%c0_39, %c0_40] : memref<8x128xf32, #tpu.memory_space<vmem>>, vector<8x128xf32>
      tpu.vector_store %arg4[%c0_39, %c0_40], %64 {strides = array<i32>} : memref<8x128xf32, #tpu.memory_space<vmem>>, vector<8x128xf32>,
    } else {
    }
    return
  }
  func.func @transform_0(%arg0: i32, %arg1: i32) -> (i32, i32) {
    %c0_i32 = arith.constant 0 : i32
    %c0_i32_0 = arith.constant 0 : i32
    return %arg0, %c0_i32 : i32, i32
  }
  func.func @transform_1(%arg0: i32, %arg1: i32) -> (i32, i32) {
    %c0_i32 = arith.constant 0 : i32
    return %arg0, %arg1 : i32, i32
  }
  func.func @transform_2(%arg0: i32, %arg1: i32) -> (i32, i32) {
    %c0_i32 = arith.constant 0 : i32
    %c0_i32_0 = arith.constant 0 : i32
    return %arg0, %c0_i32 : i32, i32
  }
}

</mosaic_0001>

<bundles_post_ra>
// kernel: tpu_custom_call.1
= control target key start
LH: loop header
LB: loop body
LE: loop exit
PB: predicated region body
PF: predicated region fallthrough
CT: control target
= control target key end

     0   :  { %v23_v0 = vlaneseq  ;;  %s177_s0 = inlined_call_operand.vmem [shape: s32[8,1], index: 0, kind: input, shape index: {}]   ;;  %s178_s1 = inlined_call_operand.vmem [shape: f32[8,128], index: 1, kind: input, shape index: {}]   ;;  %s179_s2 = inlined_call_operand.hbm [shape: f32[8,128], index: 2, kind: output, shape index: {}]  }
   0x1   :  { %7 = vsyncpa [#allocation7], 0  ;;  %v21_v1 = vld [vmem:[%s178_s1] sm:$0xff]  ;;  %vm16_vm1 = vcmask 7168   ;;  %v139_v4 = vmov -inf   ;;  %v140_v5 = vmov 0  }
   0x2   :  { %v24_v2 = vand.u32 127, %v23_v0  ;;  %17 = vst.msk [vmem:[#allocation2] sm:$0xff] %vm16_vm1, %v139_v4  ;;  %109 = vset.pattern.permute.xlu0 %v140_v5  ;;  %110 = vset.pattern.permute.xlu1 %v140_v5  ;;  %v22_v6 = vld [vmem:[%s177_s0] sm:$0xff]  ;;  %v141_v7 = vmov 0.0   ;;  %s142_s0 = smov [#allocation6]  }
   0x3   :  { %61 = vperm.xlu1 %110, %v22_v6   ;;  %18 = vst.msk [vmem:[#allocation3] sm:$0xff] %vm16_vm1, %v141_v7  ;;  %19 = vst.msk [vmem:[#allocation4] sm:$0xff] %vm16_vm1, %v141_v7  ;;  %s97_s1 = sshll.u32 %s142_s0, 4  ;;  %s98_s1 = int_to_ptr.vmem [resolvable:$true] %s97_s1 }
   0x4   :  { %vm28_vm0 = vcmp.lt.s32.totalorder %v24_v2, 32  ;;  %20 = vst.msk [vmem:[#allocation5] sm:$0xff] %vm16_vm1, %v141_v7  ;;  %s117_s13 = scalar_lea.vmem %s98_s1, 128  ;;  %p122_p1 = scmp.lt.s32.totalorder %s98_s1, %s98_s1 }
   0x5   :  { %v29_v3 = vsel %vm28_vm0, %v21_v1, -inf  ;;  %v30_v17 = vsel %vm28_vm0, %v21_v1, 0.0  ;;  %p118_p0 = scmp.ne.s32.totalorder %s98_s1, %s117_s13  ;;  %p123_p2 = scmp.lt.s32.totalorder %s117_s13, %s117_s13 }
   0x6   :  { %33 = vmax.xlane.f32.xlu0 %v29_v3 }
   0x7   :  { %p124_p3 = por %p123_p2, %p122_p1 }
   0x9   :  { %v35_v8 = vld [vmem:[#allocation2] sm:$0xff]  ;;  %p125_p4 = pnand %p124_p3, %p118_p0 }
   0xa   :  { %v50_v21 = vld [vmem:[#allocation3] sm:$0xff]  ;;  %v56_v25 = vld [vmem:[#allocation4] sm:$0xff] }
   0xb   :  { %v59_v28 = vld [vmem:[#allocation5] sm:$0xff] }
  0x7e   :  { %v62_v16 = vpop.permute.xlu1 %61 }
  0x7f   :  { %vm63_vm2 = vcmp.eq.s32.totalorder %v24_v2, %v62_v16 }
  0x80   :  { %v64_v18 = vsel %vm63_vm2, %v21_v1, 0.0 }
  0x8f   :  { %v34_v9 = vpop.xlane.xlu0 %33 }
  0x90   :  { %v36_v10 = vmax.f32 %v35_v8, %v34_v9 }
  0x92   :  { %v47_v11 = vsub.f32 %v35_v8, %v36_v10  ;;  %55 = vst.msk [vmem:[#allocation2] sm:$0xff] %vm16_vm1, %v36_v10  ;;  %39 = vperm.xlu0 %109, %v36_v10  }
  0x94   :  { %v48_v19 = vmul.f32 1.442695, %v47_v11 }
  0x99   :  { %v72_v34 = vld [vmem:[#allocation2] sm:$0xff] }
 0x10d   :  { %v40_v12 = vpop.permute.xlu0 %39 }
 0x10e   :  { %v42_v13 = vsub.f32 %v29_v3, %v40_v12 }
 0x110   :  { %v43_v14 = vmul.f32 1.442695, %v42_v13 }
 0x112   :  { %111 = vpow2.f32 %v43_v14 }
 0x113   :  { %113 = vpow2.f32 %v48_v19 }
 0x11f   :  { %v112_v15 = vpop.eup %111 }
 0x120   :  { %45 = vadd.xlane.f32.xlu1 %v112_v15  ;;  %v114_v20 = vpop.eup %113 }
 0x121   :  { %v51_v22 = vmul.f32 %v114_v20, %v50_v21 }
 0x124   :  { %31 = vadd.xlane.f32.xlu1 %v30_v17 }
 0x128   :  { %65 = vadd.xlane.f32.xlu1 %v64_v18 }
 0x1a9   :  { %v46_v23 = vpop.xlane.xlu1 %45 }
 0x1aa   :  { %v52_v24 = vadd.f32 %v51_v22, %v46_v23 }
 0x1ac   :  { %54 = vst.msk [vmem:[#allocation3] sm:$0xff] %vm16_vm1, %v52_v24 }
 0x1ad   :  { %v32_v26 = vpop.xlane.xlu1 %31 }
 0x1ae   :  { %v57_v27 = vadd.f32 %v56_v25, %v32_v26 }
 0x1b0   :  { %58 = vst.msk [vmem:[#allocation4] sm:$0xff] %vm16_vm1, %v57_v27 }
 0x1b1   :  { %v66_v29 = vpop.xlane.xlu1 %65 }
 0x1b2   :  { %v67_v30 = vadd.f32 %v66_v29, %v59_v28 }
 0x1b3   :  { %v73_v31 = vld [vmem:[#allocation3] sm:$0xff] }
 0x1b4   :  { %68 = vst.msk [vmem:[#allocation5] sm:$0xff] %vm16_vm1, %v67_v30  ;;  %115 = vlog2.f32 %v73_v31 }
 0x1b7   :  { %v81_v39 = vld [vmem:[#allocation4] sm:$0xff] }
 0x1bb   :  { %v77_v35 = vld [vmem:[#allocation5] sm:$0xff] }
 0x1c1   :  { %v116_v32 = vpop.eup %115 }
 0x1c2   :  { %v75_v33 = vmul.f32 0.6931472, %v116_v32 }
 0x1c4   :  { %v76_v36 = vadd.f32 %v75_v33, %v72_v34 }
 0x1c6   :  { %v78_v37 = vsub.f32 %v76_v36, %v77_v35  ;;  %v80_v38 = vmul.f32 32.0, %v76_v36 }
 0x1c8   :  { %v82_v40 = vsub.f32 %v80_v38, %v81_v39  ;;  %v79_v41 = vmul.f32 0.9, %v78_v37 }
 0x1ca   :  { %v83_v42 = vmul.f32 0.003125, %v82_v40 }
 0x1cc   :  { %v84_v43 = vadd.f32 %v83_v42, %v79_v41 }
 0x1ce   :  { %87 = vperm.xlu0 %109, %v84_v43  }
 0x249   :  { %v88_v44 = vpop.permute.xlu0 %87 }
 0x24a   :  { %90 = vst [vmem:[#allocation6] sm:$0xff] %v88_v44 }
 0x24b   :  { %128 = shalt.err (!%p125_p4)
}
 0x24c   :  { %100 = dma.vmem_to_hbm [thread:$0]  %s98_s1, 128, %s179_s2, [#allocation7]  }
 0x24d   :  { %137 = dma.done.wait [#allocation7], 128  }
 0x24e   :  { %138 = vsyncadd [#allocation7], 4294967168 }
 0x24f   :  { %104 = vsyncpa [#allocation7], 1 }

</bundles_post_ra>
